<compile_context>
chip_gen: v7x
topology: tpu7x:2x2x1
jax: 0.10.0
libtpu: 0.0.40
codegen_flags: <defaults>
</compile_context>

<pallas_src>
import functools

import jax
import jax.numpy as jnp
from jax.experimental import pallas as pl
from jax.experimental.pallas import tpu as pltpu


def _vmem_budget_bytes():
    """Generation-aware VMEM budget with headroom for compiler scratch."""
    cap = 64 << 20  # conservative default: v7x physical VMEM per TensorCore
    try:
        info = pltpu.get_tpu_info()
        cap = int(getattr(info, "vmem_capacity_bytes", cap) or cap)
    except Exception:
        pass
    # v7x (64 MiB) -> ~48 MiB; v5e/v6e (128 MiB) -> ~102 MiB.
    return max(int(min(int(cap * 0.8), cap - (16 << 20))), 16 << 20)


# ---------------------------------------------------------------------------
# Main path: batch-chunked single-pass kernel.  Block = (bc, C, HW).
# ---------------------------------------------------------------------------
def _cbam_chunk_kernel(x_ref, w1_ref, w2_ref, o_ref, *, inv_hw):
    # x_ref : (bc, C, HW)      input chunk (un-padded logical shape)
    # w1_ref: (C//r, C)        conv1 1x1 weight (no bias)
    # w2_ref: (C, C//r)        conv2 1x1 weight (no bias)
    x = x_ref[...]
    bc = x.shape[0]

    # AdaptiveAvgPool2d(1): accumulate in f32, scale by 1/HW.
    avg = jnp.sum(x.astype(jnp.float32), axis=2) * inv_hw            # (bc, C)
    # AdaptiveMaxPool2d(1): Mosaic masks the ragged lane tile internally.
    mx = jnp.max(x, axis=2).astype(jnp.float32)                       # (bc, C)

    # Shared MLP applied to both pooled vectors with one matmul pair.
    p = jnp.concatenate([avg, mx], axis=0)                            # (2bc, C)
    h = jax.lax.dot_general(p, w1_ref[...], (((1,), (1,)), ((), ())),
                            preferred_element_type=jnp.float32)       # (2bc, hid)
    h = jnp.maximum(h, 0.0)
    o = jax.lax.dot_general(h, w2_ref[...], (((1,), (1,)), ((), ())),
                            preferred_element_type=jnp.float32)       # (2bc, C)

    weight = jax.nn.sigmoid(o[:bc] + o[bc:])                          # (bc, C)
    o_ref[...] = (x * weight[:, :, None].astype(x.dtype)).astype(o_ref.dtype)


# ---------------------------------------------------------------------------
# Fallback path (large feature maps): two passes over HW tiles.
#   Pass 1: running sum/max pool + shared MLP + sigmoid -> per-channel weight.
#   Pass 2: scale x by the weight.
# ---------------------------------------------------------------------------
def _cbam_pool_kernel(x_ref, w1_ref, w2_ref, wgt_ref, acc_ref,
                      *, hw, tile_hw, inv_hw):
    # x_ref  : (1, C, tile_hw)
    # wgt_ref: (1, C, 1)   (resident across the HW-tile axis)
    # acc_ref: (C, 2) f32 scratch; col 0 = running sum, col 1 = running max.
    t = pl.program_id(1)

    @pl.when(t == 0)
    def _init():
        acc_ref[:, 0:1] = jnp.zeros_like(acc_ref[:, 0:1])
        acc_ref[:, 1:2] = jnp.full_like(acc_ref[:, 1:2], -jnp.inf)

    x = x_ref[0].astype(jnp.float32)                                  # (C, tile)
    if hw % tile_hw != 0:
        # Only the last tile is partially out of bounds; mask padded lanes.
        lane = jax.lax.broadcasted_iota(jnp.int32, x.shape, 1) + t * tile_hw
        valid = lane < hw
        xs = jnp.where(valid, x, 0.0)
        xm = jnp.where(valid, x, -jnp.inf)
    else:
        xs, xm = x, x

    acc_ref[:, 0:1] = acc_ref[:, 0:1] + jnp.sum(xs, axis=1, keepdims=True)
    acc_ref[:, 1:2] = jnp.maximum(acc_ref[:, 1:2],
                                  jnp.max(xm, axis=1, keepdims=True))

    @pl.when(t == pl.num_programs(1) - 1)
    def _finalize():
        p = jnp.concatenate([acc_ref[:, 0:1] * inv_hw, acc_ref[:, 1:2]],
                            axis=1)                                   # (C, 2)
        h = jnp.maximum(
            jnp.dot(w1_ref[...], p, preferred_element_type=jnp.float32), 0.0)
        o = jnp.dot(w2_ref[...], h, preferred_element_type=jnp.float32)  # (C, 2)
        wgt_ref[0] = jax.nn.sigmoid(o[:, 0:1] + o[:, 1:2])               # (C, 1)


def _cbam_scale_kernel(x_ref, wgt_ref, o_ref):
    x = x_ref[...]                                                    # (1,C,tile)
    w = wgt_ref[...].astype(x.dtype)                                  # (1,C,1)
    o_ref[...] = (x * w).astype(o_ref.dtype)


# ---------------------------------------------------------------------------
# Wrapper
# ---------------------------------------------------------------------------
def cbam_channel_attention(x, w1, w2, *, force_fallback=False, fallback_tile=None):
    """x: (B, C, H, W); w1: (C//r, C); w2: (C, C//r) -> (B, C, H, W)."""
    B, C, H, W = x.shape
    HW = H * W
    hidden = w1.shape[0]
    inv_hw = 1.0 / HW

    x2 = x.reshape(B, C, HW)
    bpe = x2.dtype.itemsize
    budget = _vmem_budget_bytes()

    weights_bytes = 4 * hidden * C * 4            # both weights, double-buffered
    cast_extra = 0 if x2.dtype == jnp.float32 else C * HW * 4  # f32 temp for avg

    # Pick the largest batch chunk that fits the VMEM budget and still gives
    # >= 2 grid steps (pipelining + megacore) whenever B >= 2.
    bc = None
    if not force_fallback:
        for cand in range(B, 0, -1):
            if B % cand:
                continue
            steps = B // cand
            if B >= 2 and steps < 2:
                continue
            resident = (4 * cand * C * HW * bpe + cand * cast_extra
                        + weights_bytes + (2 << 20))
            if resident <= budget:
                bc = cand
                break

    if bc is not None:
        kernel = functools.partial(_cbam_chunk_kernel, inv_hw=inv_hw)
        out = pl.pallas_call(
            kernel,
            out_shape=jax.ShapeDtypeStruct((B, C, HW), x.dtype),
            grid_spec=pltpu.PrefetchScalarGridSpec(
                num_scalar_prefetch=0,
                grid=(B // bc,),
                in_specs=[
                    pl.BlockSpec((bc, C, HW), lambda i: (i, 0, 0)),
                    pl.BlockSpec((hidden, C), lambda i: (0, 0)),
                    pl.BlockSpec((C, hidden), lambda i: (0, 0)),
                ],
                out_specs=pl.BlockSpec((bc, C, HW), lambda i: (i, 0, 0)),
            ),
            compiler_params=pltpu.CompilerParams(
                dimension_semantics=("parallel",),
                vmem_limit_bytes=budget),
        )(x2, w1, w2)
        return out.reshape(B, C, H, W)

    # -------------------- HW-tiled two-pass fallback --------------------
    if fallback_tile is not None:
        tile = int(fallback_tile)
    else:
        # lane tile sized so 2 in + 2 out buffers stay around ~16 MiB
        tile = ((4 << 20) // max(1, C * bpe)) // 128 * 128
        tile = max(128, min(8192, tile))
    if tile >= HW:
        tile = HW                    # single full-extent tile (no 128 rule)
    n_tiles = -(-HW // tile)

    pool_kernel = functools.partial(_cbam_pool_kernel,
                                    hw=HW, tile_hw=tile, inv_hw=inv_hw)
    wgt = pl.pallas_call(
        pool_kernel,
        out_shape=jax.ShapeDtypeStruct((B, C, 1), jnp.float32),
        grid_spec=pltpu.PrefetchScalarGridSpec(
            num_scalar_prefetch=0,
            grid=(B, n_tiles),
            in_specs=[
                pl.BlockSpec((1, C, tile), lambda b, t: (b, 0, t)),
                pl.BlockSpec((hidden, C), lambda b, t: (0, 0)),
                pl.BlockSpec((C, hidden), lambda b, t: (0, 0)),
            ],
            out_specs=pl.BlockSpec((1, C, 1), lambda b, t: (b, 0, 0)),
            scratch_shapes=[pltpu.VMEM((C, 2), jnp.float32)],
        ),
        compiler_params=pltpu.CompilerParams(
            dimension_semantics=("parallel", "arbitrary"),
            vmem_limit_bytes=budget),
    )(x2, w1, w2)

    out = pl.pallas_call(
        _cbam_scale_kernel,
        out_shape=jax.ShapeDtypeStruct((B, C, HW), x.dtype),
        grid_spec=pltpu.PrefetchScalarGridSpec(
            num_scalar_prefetch=0,
            grid=(B, n_tiles),
            in_specs=[
                pl.BlockSpec((1, C, tile), lambda b, t: (b, 0, t)),
                pl.BlockSpec((1, C, 1), lambda b, t: (b, 0, 0)),
            ],
            out_specs=pl.BlockSpec((1, C, tile), lambda b, t: (b, 0, t)),
        ),
        compiler_params=pltpu.CompilerParams(
            dimension_semantics=("parallel", "parallel"),
            vmem_limit_bytes=budget),
    )(x2, wgt)
    return out.reshape(B, C, H, W)


# ---------------------------------------------------------------------------
# Pure-JAX reference of the PyTorch forward
# ---------------------------------------------------------------------------
def cbam_reference(x, w1, w2):
    avg = jnp.mean(x, axis=(2, 3))                        # (B, C)
    mx = jnp.max(x, axis=(2, 3))                          # (B, C)

    def mlp(p):
        h = jnp.maximum(p @ w1.T, 0.0)                    # (B, C//r)
        return h @ w2.T                                   # (B, C)

    weight = jax.nn.sigmoid(mlp(avg) + mlp(mx))           # (B, C)
    return x * weight[:, :, None, None]


if __name__ == "__main__":
    def run_case(B, C, H, W, ratio, seed, **kwargs):
        hidden = C // ratio
        key = jax.random.PRNGKey(seed)
        kx, k1, k2 = jax.random.split(key, 3)
        x = jax.random.normal(kx, (B, C, H, W), dtype=jnp.float32)
        # Conv2d(C, C//r, 1, bias=False).weight -> (hidden, C, 1, 1)
        w1 = jax.random.normal(k1, (hidden, C), dtype=jnp.float32) * 0.1
        # Conv2d(C//r, C, 1, bias=False).weight -> (C, hidden, 1, 1)
        w2 = jax.random.normal(k2, (C, hidden), dtype=jnp.float32) * 0.1

        out = cbam_channel_attention(x, w1, w2, **kwargs)
        out = jax.block_until_ready(out)
        ref = cbam_reference(x, w1, w2)
        assert out.shape == (B, C, H, W)
        assert jnp.allclose(out, ref, atol=1e-5, rtol=1e-5), "mismatch vs reference"

    # Primary config: batch-chunked main path (HW multiple of 128, 2 grid steps).
    run_case(2, 32, 16, 16, 8, 0)
    # Non-multiple-of-128 spatial size: exercises ragged-lane handling, no padding.
    run_case(2, 32, 10, 10, 8, 1)
    # B == 1 corner case (single grid step).
    run_case(1, 32, 16, 16, 8, 2)
    # Forced HW-tiled two-pass fallback with a ragged last tile (144 = 128 + 16).
    run_case(2, 32, 12, 12, 8, 3, force_fallback=True, fallback_tile=128)

    print("KERNEL_OK")
</pallas_src>

<mosaic_0001>
module attributes {stable_mosaic.version = 11 : i64} {
  func.func @_cbam_chunk_kernel(%arg0: i32, %arg1: memref<1x32x256xf32, #tpu.memory_space<vmem>>, %arg2: memref<4x32xf32, #tpu.memory_space<vmem>>, %arg3: memref<32x4xf32, #tpu.memory_space<vmem>>, %arg4: memref<1x32x256xf32, #tpu.memory_space<vmem>>) attributes {dimension_semantics = [#tpu.dimension_semantics<parallel>], iteration_bounds = array<i64: 2>, scalar_prefetch = 0 : i64, scratch_operands = 0 : i64, tpu.core_type = #tpu.core_type<tc>, window_params = [{transform_indices = @transform_0, window_bounds = array<i64: 1, 32, 256>}, {pipeline_mode = #tpu.pipeline_mode<synchronous>, transform_indices = @transform_1, window_bounds = array<i64: 4, 32>}, {pipeline_mode = #tpu.pipeline_mode<synchronous>, transform_indices = @transform_2, window_bounds = array<i64: 32, 4>}, {transform_indices = @transform_3, window_bounds = array<i64: 1, 32, 256>}]} {
    %c0 = arith.constant 0 : index
    %c0_0 = arith.constant 0 : index
    %c0_1 = arith.constant 0 : index
    %0 = vector.load %arg1[%c0, %c0_0, %c0_1] : memref<1x32x256xf32, #tpu.memory_space<vmem>>, vector<1x32x256xf32>
    %cst = arith.constant dense<0.000000e+00> : vector<1x32xf32>
    %1 = vector.multi_reduction <add>, %0, %cst [2] : vector<1x32x256xf32> to vector<1x32xf32>
    %cst_2 = arith.constant 3.906250e-03 : f32
    %2 = vector.broadcast %cst_2 : f32 to vector<1x32xf32>
    %3 = arith.mulf %1, %2 : vector<1x32xf32>
    %cst_3 = arith.constant dense<0xFF800000> : vector<1x32xf32>
    %4 = vector.multi_reduction <maximumf>, %0, %cst_3 [2] : vector<1x32x256xf32> to vector<1x32xf32>
    %5 = tpu.concatenate %3, %4 in 0 : vector<1x32xf32>, vector<1x32xf32> -> vector<2x32xf32>
    %c0_4 = arith.constant 0 : index
    %c0_5 = arith.constant 0 : index
    %6 = vector.load %arg2[%c0_4, %c0_5] : memref<4x32xf32, #tpu.memory_space<vmem>>, vector<4x32xf32>
    %cst_6 = arith.constant dense<0.000000e+00> : vector<2x4xf32>
    %7 = tpu.matmul %5, %6, %cst_6 {dimension_numbers = #tpu.dot_dimension_numbers<[1], [1], [0], [0], [0, 0, 1, 0], [], []>} : vector<2x32xf32>, vector<4x32xf32>, vector<2x4xf32> -> vector<2x4xf32>
    %cst_7 = arith.constant 0.000000e+00 : f32
    %8 = vector.broadcast %cst_7 : f32 to vector<2x4xf32>
    %9 = arith.maximumf %7, %8 : vector<2x4xf32>
    %c0_8 = arith.constant 0 : index
    %c0_9 = arith.constant 0 : index
    %10 = vector.load %arg3[%c0_8, %c0_9] : memref<32x4xf32, #tpu.memory_space<vmem>>, vector<32x4xf32>
    %cst_10 = arith.constant dense<0.000000e+00> : vector<2x32xf32>
    %11 = tpu.matmul %9, %10, %cst_10 {dimension_numbers = #tpu.dot_dimension_numbers<[1], [1], [0], [0], [0, 0, 1, 0], [], []>} : vector<2x4xf32>, vector<32x4xf32>, vector<2x32xf32> -> vector<2x32xf32>
    %12 = vector.extract_strided_slice %11 {offsets = [0, 0], sizes = [1, 32], strides = [1, 1]} : vector<2x32xf32> to vector<1x32xf32>
    %13 = vector.extract_strided_slice %11 {offsets = [1, 0], sizes = [1, 32], strides = [1, 1]} : vector<2x32xf32> to vector<1x32xf32>
    %14 = arith.addf %12, %13 : vector<1x32xf32>
    %15 = arith.negf %14 : vector<1x32xf32>
    %16 = math.exp %15 : vector<1x32xf32>
    %cst_11 = arith.constant 1.000000e+00 : f32
    %17 = vector.broadcast %cst_11 : f32 to vector<1x32xf32>
    %18 = arith.addf %17, %16 : vector<1x32xf32>
    %19 = arith.divf %17, %18 : vector<1x32xf32>
    %20 = vector.shape_cast %19 : vector<1x32xf32> to vector<1x32x1xf32>
    %21 = vector.broadcast %20 : vector<1x32x1xf32> to vector<1x32x256xf32>
    %22 = arith.mulf %0, %21 : vector<1x32x256xf32>
    %c0_12 = arith.constant 0 : index
    %c0_13 = arith.constant 0 : index
    %c0_14 = arith.constant 0 : index
    %23 = vector.load %arg4[%c0_12, %c0_13, %c0_14] : memref<1x32x256xf32, #tpu.memory_space<vmem>>, vector<1x32x256xf32>
    tpu.vector_store %arg4[%c0_12, %c0_13, %c0_14], %22 {strides = array<i32>} : memref<1x32x256xf32, #tpu.memory_space<vmem>>, vector<1x32x256xf32>,
    return
  }
  func.func @transform_0(%arg0: i32) -> (i32, i32, i32) {
    %c0_i32 = arith.constant 0 : i32
    %c0_i32_0 = arith.constant 0 : i32
    %c0_i32_1 = arith.constant 0 : i32
    return %arg0, %c0_i32, %c0_i32_0 : i32, i32, i32
  }
  func.func @transform_1(%arg0: i32) -> (i32, i32) {
    %c0_i32 = arith.constant 0 : i32
    %c0_i32_0 = arith.constant 0 : i32
    %c0_i32_1 = arith.constant 0 : i32
    return %c0_i32, %c0_i32_0 : i32, i32
  }
  func.func @transform_2(%arg0: i32) -> (i32, i32) {
    %c0_i32 = arith.constant 0 : i32
    %c0_i32_0 = arith.constant 0 : i32
    %c0_i32_1 = arith.constant 0 : i32
    return %c0_i32, %c0_i32_0 : i32, i32
  }
  func.func @transform_3(%arg0: i32) -> (i32, i32, i32) {
    %c0_i32 = arith.constant 0 : i32
    %c0_i32_0 = arith.constant 0 : i32
    %c0_i32_1 = arith.constant 0 : i32
    return %arg0, %c0_i32, %c0_i32_0 : i32, i32, i32
  }
}

</mosaic_0001>

<bundles_post_ra>
// kernel: tpu_custom_call.1
= control target key start
LH: loop header
LB: loop body
LE: loop exit
PB: predicated region body
PF: predicated region fallthrough
CT: control target
= control target key end

     0   :  { %8 = vsyncpa [#allocation3], 0  ;;  %s1051_s0 = inlined_call_operand.hbm [shape: f32[2,32,256], index: 0, kind: input, shape index: {}]   ;;  %s1052_s1 = inlined_call_operand.vmem [shape: f32[4,32], index: 1, kind: input, shape index: {}]   ;;  %s1053_s2 = inlined_call_operand.vmem [shape: f32[32,4], index: 2, kind: input, shape index: {}]   ;;  %s1054_s3 = inlined_call_operand.hbm [shape: f32[2,32,256], index: 3, kind: output, shape index: {}]  }
   0x1   :  { %10 = vsyncpa [#allocation3 + $0x1], 0 }
   0x2   :  { %11 = vsyncpa [#allocation4], 0 }
   0x3   :  { %13 = vsyncpa [#allocation4 + $0x1], 0  ;;  %s823_s12 = smov 0   ;;  %s825_s13 = smov 0  }
   0x4   :  { %s827_s14 = smov 0   ;;  %s829_s15 = smov 0  }
   0x5 LB: > { %s844_s16 = sadd.s32 4294967295, %s792_s15   ;;  %s584_s17 = sadd.s32 4294967294, %s792_s15   ;;  %s792_s15 = sphi %s829_s15, %s1067_s15   ;;  %s788_s14 = sphi %s827_s14, %s1066_s14   ;;  %s784_s13 = sphi %s825_s13, %s1065_s13   ;;  %s780_s12 = sphi %s823_s12, %s1064_s12  }
   0x6   : > { %s848_s18 = sadd.s32 1, %s792_s15   ;;  %s26_s19 = sadd.s32 1, %s788_s14 }
   0x7   : > { %s23_s20 = ssub.s32 %s792_s15, %s848_s18  ;;  %p33_p0 = scmp.ne.s32.totalorder %s788_s14, %s784_s13 }
   0x8   : > { %p24_p1 = scmp.eq.s32.totalorder %s23_s20, 0  ;;  %p34_p2 = scmp.eq.s32.totalorder %s792_s15, 0 }
   0x9   : > { %p39_p3 = scmp.ne.s32.totalorder %s784_s13, %s780_s12  ;;  %p40_p4 = scmp.eq.s32.totalorder %s844_s16, 0 }
   0xa   : > { %s860_s21 = scalar_select %p24_p1, %s788_s14, %s26_s19  }
   0xb   : > { %p862_p5 = por %p34_p2, %p33_p0  ;;  %p866_p6 = por %p40_p4, %p39_p3 }
   0xc   : > { %p105_p7 = scmp.eq.s32.totalorder %s844_s16, 1  ;;  %p111_p8 = scmp.eq.s32.totalorder %s584_s17, 1 }
   0xd   : > { %p651_p10 = scmp.lt.s32.totalorder %s792_s15, 2  ;;  %s137_s26 = sand.u32 1, %s788_s14  }
   0xe   : > { %p873_p11 = por %p105_p7, %p33_p0  ;;  %p877_p12 = por %p111_p8, %p39_p3 }
   0xf   : > { %s606_s27 = sshll.u32 %s792_s15, 10  ;;  %s587_s28 = sshll.u32 %s137_s26, 6 }
  0x10   : > { %s1058_s24 = scalar_select %p873_p11, 1, 0 }
  0x11   : > { %s1059_s25 = scalar_select %p877_p12, 1, 0 }
  0x12   : > { %s886_s4 = scalar_lea.hbm %s1051_s0, %s606_s27  ;;  %s141_s5 = scalar_lea.vmem [#allocation2], %s587_s28 }
  0x13   : > { %s148_s6 = sshll.u32 %s141_s5, 4  ;;  %p890_p13 = pnand %p651_p10, %p862_p5  ;;  %s894_s6 = int_to_ptr.vmem [resolvable:$true] %s148_s6 }
  0x14   : > { %s896_s8 = scalar_lea.sflag [#allocation3], %s137_s26  ;;  %s696_s9 = scalar_lea.hbm %s886_s4, 1024 }
  0x15   : > { %p697_p0 = scmp.ne.s32.totalorder %s886_s4, %s696_s9  ;;  %p698_p1 = pneg %p890_p13 }
  0x16   : > { %s701_s17 = scalar_lea.hbm %s1051_s0, 2048  ;;  %p702_p4 = scmp.lt.u32.totalorder %s886_s4, %s1051_s0 }
  0x17   : > { %p699_p2 = pnand %p698_p1, %p697_p0  ;;  %p703_p5 = scmp.lt.u32.totalorder %s701_s17, %s696_s9 }
  0x18   : > { %p705_p8 = scmp.lt.u32.totalorder %s696_s9, %s886_s4 }
  0x19   : > { %p700_p3 = pneg %p699_p2  ;;  %p704_p7 = por %p703_p5, %p702_p4 }
  0x1b   : > { %p706_p10 = por %p705_p8, %p704_p7 }
  0x1d   : > { %p707_p9 = pnand %p706_p10, %p700_p3 }
  0x1f   : > { %710 = shalt.err (!%p707_p9)
}
  0x20   : > { %s711_s22 = scalar_lea.vmem %s894_s6, 1024  ;;  %s794_s26 = smov [#allocation2]  }
  0x21   : > { %p712_p0 = scmp.ne.s32.totalorder %s894_s6, %s711_s22  ;;  %s716_s27 = sshll.u32 %s794_s26, 4  ;;  %s717_s27 = int_to_ptr.vmem [resolvable:$false] %s716_s27 }
  0x22   : > { %s718_s28 = scalar_lea.vmem %s717_s27, 2048  ;;  %p719_p11 = scmp.lt.s32.totalorder %s894_s6, %s717_s27 }
  0x23   : > { %p714_p2 = pnand %p712_p0, %p698_p1  ;;  %p720_p4 = scmp.lt.s32.totalorder %s718_s28, %s711_s22 }
  0x25   : > { %p715_p12 = pneg %p714_p2  ;;  %p721_p5 = por %p720_p4, %p719_p11 }
  0x27   : > { %p722_p7 = pnand %p721_p5, %p715_p12 }
  0x29   : > { %725 = shalt.err (!%p722_p7)
}
  0x2a   : > { %s795_s29 = smov 256   ;;  %s796_s30 = smov 16  }
  0x2b   : > { %646 = dma.hbm_to_vmem [thread:$0]  (!%p890_p13), %s886_s4, 1024, %s894_s6, %s896_s8, %s795_s29, %s795_s29, %s796_s30  }
  0x2c   : > { %p590_p9 = scmp.ge.s32.totalorder %s792_s15, 1  ;;  %p156_p1 = scmp.lt.s32.totalorder %s792_s15, 3 }
  0x2e   : > { %p157_p3 = pnand %p590_p9, %p156_p1 }
  0x2f   : > { %s927_s5 = sand.u32 (!%p157_p3), 1, %s784_s13  }
  0x30   : > { %160 = sbr.rel (%p157_p3) target bundleno = 817 (0x331), region = 32  ;;  %s591_s9 = sshll.u32 (!%p157_p3), %s927_s5, 6 }
  0x31   : > { %s163_s10 = scalar_lea.sflag (!%p157_p3), [#allocation3], %s927_s5  ;;  %s166_s11 = scalar_lea.vmem (!%p157_p3), [#allocation2], %s591_s9 }
  0x37   : > { %771 = dma.done.wait (%p866_p6), %s163_s10, 1024  }
  0x38   : > { %773 = vsyncadd (%p866_p6), %s163_s10, 4294966272  ;;  %v937_v0 = vld [vmem:[%s166_s11 + $0x20] sm:$0xff]  ;;  %v939_v1 = vld [vmem:[%s166_s11 + $0x28] sm:$0xff]  ;;  %v797_v16 = vmov 0.0   ;;  %vm284_vm0 = vcmask 261120   ;;  %vm798_vm1 = vmmov 0   ;;  %v229_v25 = vlaneseq }
  0x39   : > { %v941_v2 = vld [vmem:[%s166_s11] sm:$0xff]  ;;  %v203_v3 = vadd.f32 %v939_v1, %v937_v0  ;;  %v945_v4 = vld [vmem:[%s166_s11 + $0x8] sm:$0xff]  ;;  %v947_v5 = vld [vmem:[%s166_s11 + $0x30] sm:$0xff]  ;;  %v219_v15 = vmax.f32 %v937_v0, %v939_v1  ;;  %615 = vmatprep.subr.mxu0 %v797_v16  ;;  %617 = vmatprep.mubr.msk.f32.mxu0 %vm798_vm1, %v797_v16  ;;  %vm366_vm2 = vcmask 31744   ;;  %v799_v20 = vmov 0.0|0.0   ;;  %s188_s27 = scalar_lea.vmem [#allocation5], %s591_s9 }
  0x3a   : > { %v949_v6 = vld [vmem:[%s166_s11 + $0x38] sm:$0xff]  ;;  %v197_v7 = vadd.f32 %v945_v4, %v941_v2  ;;  %v953_v8 = vld [vmem:[%s166_s11 + $0x10] sm:$0xff]  ;;  %v213_v13 = vmax.f32 %v941_v2, %v945_v4  ;;  %v283_v17 = vld [vmem:[%s1052_s1] sm:$0xf]  ;;  %628 = vmatprep.mubr.msk.f32.mxu1 %vm798_vm1, %v797_v16  ;;  %631 = vmatprep.subr.bf16.mxu1 %v799_v20  ;;  %v230_v26 = vand.u32 127, %v229_v25  ;;  %v232_v29 = vshrl.u32 %v229_v25, 7 }
  0x3b   : > { %v955_v9 = vld [vmem:[%s166_s11 + $0x18] sm:$0xff]  ;;  %204 = vadd.xlane.f32.xlu1 %v203_v3  ;;  %v206_v10 = vadd.f32 %v949_v6, %v947_v5  ;;  %v222_v14 = vmax.f32 %v947_v5, %v949_v6  ;;  %616 = vmatpush3.xpose.msk.msra.mxu0 %vm284_vm0, %v283_v17  ;;  %v362_v18 = vld [vmem:[%s1053_s2] sm:$0xff]  ;;  %v363_v19 = vld [vmem:[%s1053_s2 + $0x8] sm:$0xff]  ;;  %vm240_vm4 = vcmask 130112   ;;  %vm247_vm5 = vcmask 195712   ;;  %s511_s28 = sshll.u32 %s188_s27, 4  ;;  %s1000_s28 = int_to_ptr.vmem [resolvable:$true] %s511_s28 }
  0x3c   : > { %198 = vadd.xlane.f32.xlu0 %v197_v7  ;;  %v200_v11 = vadd.f32 %v955_v9, %v953_v8  ;;  %v216_v12 = vmax.f32 %v953_v8, %v955_v9  ;;  %v632_v21 = vpack.c.bf16 %v363_v19, %v362_v18  ;;  %vm633_vm3 = vmpackc.low %vm366_vm2, %vm366_vm2  ;;  %v364_v22 = vld [vmem:[%s1053_s2 + $0x10] sm:$0xff]  ;;  %v365_v23 = vld [vmem:[%s1053_s2 + $0x18] sm:$0xff]  ;;  %v235_v28 = vadd.s32 4294967288, %v230_v26  ;;  %s607_s29 = sshll.u32 %s844_s16, 10  ;;  %s498_s16 = scalar_lea.sflag [#allocation4], %s927_s5 }
  0x3d   : > { %v636_v24 = vpack.c.bf16 %v365_v23, %v364_v22  ;;  %v242_v31 = vadd.s32 4294967280, %v230_v26  ;;  %v233_v34 = vsub.s32 %v230_v26, %v232_v29  ;;  %v249_v36 = vadd.s32 4294967272, %v230_v26  ;;  %s1005_s10 = scalar_lea.hbm %s1054_s3, %s607_s29  ;;  %s726_s11 = scalar_lea.vmem %s1000_s28, 1024 }
  0x3e   : > { %634 = vmatpush3.bf16.xpose.msk.msra.mxu1 %vm633_vm3, %v632_v21  ;;  %v238_v33 = vsub.s32 %v235_v28, %v232_v29  ;;  %vm254_vm6 = vcmask 261312   ;;  %vm281_vm7 = vcmask 1040384   ;;  %v464_v16 = vsub.s32 0, %v232_v29  ;;  %p727_p6 = scmp.ne.s32.totalorder %s1000_s28, %s726_s11  ;;  %p1061_p11 = scmp.ne.s32.totalorder %s1058_s24, 0 }
  0x3f   : > { %207 = vadd.xlane.f32.xlu1 %v206_v10  ;;  %635 = vmatprep.subr.bf16.mxu1 %v799_v20  ;;  %v245_v39 = vsub.s32 %v242_v31, %v232_v29  ;;  %v252_v44 = vsub.s32 %v249_v36, %v232_v29  ;;  %s800_s23 = smov [#allocation5]  }
  0x40   : > { %201 = vadd.xlane.f32.xlu0 %v200_v11  ;;  %p728_p12 = pnand %p727_p6, %p1061_p11  ;;  %s730_s4 = sshll.u32 %s800_s23, 4  ;;  %s731_s4 = int_to_ptr.vmem [resolvable:$false] %s730_s4 }
  0x41   : > { %s732_s6 = scalar_lea.vmem %s731_s4, 2048  ;;  %p733_p8 = scmp.lt.s32.totalorder %s1000_s28, %s731_s4 }
  0x42   : > { %p729_p13 = pneg %p728_p12  ;;  %p734_p10 = scmp.lt.s32.totalorder %s732_s6, %s726_s11 }
  0x43   : > { %217 = vmax.xlane.f32.xlu1 %v216_v12 }
  0x44   : > { %214 = vmax.xlane.f32.xlu0 %v213_v13  ;;  %p735_p0 = por %p734_p10, %p733_p8 }
  0x46   : > { %638 = vmatpush3.bf16.xpose.msk.msra.mxu1 %vm633_vm3, %v636_v24  ;;  %p736_p2 = pnand %p735_p0, %p729_p13 }
  0x47   : > { %223 = vmax.xlane.f32.xlu1 %v222_v14 }
  0x48   : > { %220 = vmax.xlane.f32.xlu0 %v219_v15 }
  0xc8   : > { %v205_v27 = vpop.xlane.xlu1 %204 }
  0xc9   : > { %v199_v30 = vpop.xlane.xlu0 %198  ;;  %v211_v40 = vmul.f32 0.00390625, %v205_v27 }
  0xca   : > { %v209_v35 = vmul.f32 0.00390625, %v199_v30 }
  0xcb   : > { %v246_v50 = vrot.slane %v211_v40, %v245_v39 }
  0xcc   : > { %v208_v32 = vpop.xlane.xlu1 %207  ;;  %v234_v43 = vrot.slane %v209_v35, %v233_v34 }
  0xcd   : > { %v202_v37 = vpop.xlane.xlu0 %201  ;;  %v212_v45 = vmul.f32 0.00390625, %v208_v32 }
  0xce   : > { %v210_v38 = vmul.f32 0.00390625, %v202_v37 }
  0xcf   : > { %v253_v52 = vrot.slane %v212_v45, %v252_v44 }
  0xd0   : > { %v239_v41 = vrot.slane %v210_v38, %v238_v33  ;;  %v218_v42 = vpop.xlane.xlu1 %217 }
  0xd1   : > { %v215_v46 = vpop.xlane.xlu0 %214  ;;  %v268_v48 = vrot.slane %v218_v42, %v238_v33 }
  0xd2   : > { %v241_v47 = vsel %vm240_vm4, %v239_v41, %v234_v43  ;;  %v264_v49 = vrot.slane %v215_v46, %v233_v34 }
  0xd3   : > { %v248_v56 = vsel %vm247_vm5, %v246_v50, %v241_v47 }
  0xd4   : > { %v224_v51 = vpop.xlane.xlu1 %223  ;;  %v269_v57 = vsel %vm240_vm4, %v268_v48, %v264_v49  ;;  %v255_v60 = vsel %vm254_vm6, %v253_v52, %v248_v56 }
  0xd5   : > { %v221_v53 = vpop.xlane.xlu0 %220  ;;  %v278_v54 = vrot.slane %v224_v51, %v252_v44 }
  0xd6   : > { %v273_v55 = vrot.slane %v221_v53, %v245_v39 }
  0xd8   : > { %v274_v58 = vsel %vm247_vm5, %v273_v55, %v269_v57 }
  0xd9   : > { %v279_v59 = vsel %vm254_vm6, %v278_v54, %v274_v58 }
  0xda   : > { %v282_v61 = vsel %vm281_vm7, %v255_v60, %v279_v59 }
  0xdb   : > { %618 = vmatmul.mubr.msk.f32.vlgmr.msra.gmra.mrb[0].mxu0 %vm284_vm0, %v282_v61 }
 0x1ae   : > { %v357_v62 = vpop.f32.mrb[0].mxu0 }
 0x1af   : > { %v361_v63 = vmax.f32 %v357_v62, 0.0  ;;  %v619_v3 = vpop.f32.mrb[1].mxu0 }
 0x1b1   : > { %629 = vmatmul.mubr.msk.f32.vlgmr.msra.gmra.mrb[0].mxu1 %vm366_vm2, %v361_v63 }
 0x284   : > { %v448_v7 = vpop.f32.mrb[0].mxu1 }
 0x285   : > { %v453_v10 = vrot.slane %v448_v7, 1  ;;  %v630_v11 = vpop.f32.mrb[1].mxu1 }
 0x287   : > { %v455_v12 = vadd.f32 %v453_v10, %v448_v7 }
 0x289   : > { %v600_v13 = vmul.f32 -1.442695, %v455_v12 }
 0x28b   : > { %692 = vpow2.f32 %v600_v13 }
 0x295   : > { %v693_v14 = vpop.eup %692 }
 0x296   : > { %v459_v15 = vadd.f32 1.0, %v693_v14 }
 0x298   : > { %694 = vrcp.f32 %v459_v15 }
 0x2a2   : > { %v695_v17 = vpop.eup %694 }
 0x2a3   : > { %v465_v18 = vrot.slane %v695_v17, %v464_v16 }
 0x2a5   : > { %471 = vbcast.lane.b32.xlu1 %v465_v18, 264  ;;  %467 = vbcast.lane.b32.xlu0 %v465_v18, 256 }
 0x2a9   : > { %475 = vbcast.lane.b32.xlu1 %v465_v18, 272 }
 0x2ad   : > { %479 = vbcast.lane.b32.xlu1 %v465_v18, 280 }
 0x317   : > { %v472_v19 = vpop.permute.xlu1 %471  ;;  %v468_v20 = vpop.permute.xlu0 %467 }
 0x318   : > { %v483_v21 = vmul.f32 %v472_v19, %v953_v8  ;;  %v484_v22 = vmul.f32 %v472_v19, %v955_v9  ;;  %v481_v23 = vmul.f32 %v468_v20, %v941_v2  ;;  %v482_v24 = vmul.f32 %v468_v20, %v945_v4 }
 0x31a   : > { %491 = vst [vmem:[%s188_s27 + $0x10] sm:$0xff] %v483_v21  ;;  %492 = vst [vmem:[%s188_s27 + $0x18] sm:$0xff] %v484_v22 }
 0x31b   : > { %489 = vst [vmem:[%s188_s27] sm:$0xff] %v481_v23  ;;  %490 = vst [vmem:[%s188_s27 + $0x8] sm:$0xff] %v482_v24  ;;  %v476_v25 = vpop.permute.xlu1 %475 }
 0x31c   : > { %v485_v26 = vmul.f32 %v476_v25, %v937_v0  ;;  %v486_v8 = vmul.f32 %v476_v25, %v939_v1 }
 0x31e   : > { %493 = vst [vmem:[%s188_s27 + $0x20] sm:$0xff] %v485_v26  ;;  %494 = vst [vmem:[%s188_s27 + $0x28] sm:$0xff] %v486_v8 }
 0x31f   : > { %v480_v2 = vpop.permute.xlu1 %479 }
 0x320   : > { %v487_v4 = vmul.f32 %v480_v2, %v947_v5  ;;  %v488_v0 = vmul.f32 %v480_v2, %v949_v6 }
 0x322   : > { %495 = vst [vmem:[%s188_s27 + $0x30] sm:$0xff] %v487_v4  ;;  %496 = vst [vmem:[%s188_s27 + $0x38] sm:$0xff] %v488_v0 }
 0x323   : > { %739 = shalt.err (!%p736_p2)
}
 0x324   : > { %s740_s7 = scalar_lea.hbm %s1005_s10, 1024  ;;  %s744_s19 = scalar_lea.hbm %s1054_s3, 2048 }
 0x325   : > { %p741_p4 = scmp.ne.s32.totalorder %s1005_s10, %s740_s7  ;;  %p745_p9 = scmp.lt.u32.totalorder %s1005_s10, %s1054_s3 }
 0x326   : > { %p746_p1 = scmp.lt.u32.totalorder %s744_s19, %s740_s7  ;;  %p748_p6 = scmp.lt.u32.totalorder %s740_s7, %s1005_s10 }
 0x327   : > { %p742_p5 = pnand %p741_p4, %p1061_p11 }
 0x328   : > { %p747_p3 = por %p746_p1, %p745_p9 }
 0x329   : > { %p743_p7 = pneg %p742_p5 }
 0x32a   : > { %p749_p12 = por %p748_p6, %p747_p3 }
 0x32c   : > { %p750_p13 = pnand %p749_p12, %p743_p7 }
 0x32e   : > { %753 = shalt.err (!%p750_p13)
}
 0x32f   : > { %s801_s26 = smov 256   ;;  %s802_s27 = smov 16  }
 0x330   : > { %641 = dma.vmem_to_hbm [thread:$0]  (%p1061_p11), %s1000_s28, 1024, %s1005_s10, %s498_s16, %s801_s26, %s801_s26, %s802_s27  }
 0x331 PF: > { %s526_s29 = sand.u32 1, %s780_s12   ;;  %p1062_p8 = scmp.ne.s32.totalorder %s1059_s25, 0 }
 0x332   : > { %p1063_p10 = scmp.ge.s32.totalorder %s792_s15, 2  ;;  %s527_s30 = scalar_lea.sflag [#allocation4], %s526_s29 }
 0x334   : > { %p648_p0 = pnand %p1063_p10, %p1062_p8 }
 0x336   : > { %775 = dma.done.wait (!%p648_p0), %s527_s30, 1024  }
 0x337   : > { %777 = vsyncadd (!%p648_p0), %s527_s30, 4294966272  ;;  %p16_p2 = scmp.ge.s32.totalorder %s848_s18, 4   ;;  %s1064_s12 = smov %s784_s13 }
 0x338   : > { %s1065_s13 = smov %s788_s14  ;;  %s1066_s14 = smov %s860_s21 }
 0x339   : > { %s1067_s15 = smov %s848_s18  ;;  %18 = sbr.rel (!%p16_p2) target bundleno = 5 (0x5), region = 77 }
 0x340   :  { %532 = vsyncpa [#allocation3], 1 }
 0x341   :  { %534 = vsyncpa [#allocation3 + $0x1], 1 }
 0x342   :  { %535 = vsyncpa [#allocation4], 1 }
 0x343   :  { %537 = vsyncpa [#allocation4 + $0x1], 1 }

</bundles_post_ra>
